<compile_context>
chip_gen: v6e
topology: v6e:2x2x1
jax: 0.10.0
libtpu: 0.0.40
codegen_flags: <defaults>
</compile_context>

<pallas_src>
import functools
import math

import jax
import jax.numpy as jnp
from jax.experimental import pallas as pl
from jax.experimental.pallas import tpu as pltpu


# ----------------------------------------------------------------------------
# Fused kernel: conv(im2col)+ReLU -> concat -> BiLSTM -> tanh+maxpool -> linear
# ----------------------------------------------------------------------------
def _fused_clstm2_kernel(kernel_sizes, pad_max, *refs):
    nk = len(kernel_sizes)
    it = iter(refs)
    xpad_ref = next(it)                                    # (B, S + 2*pad_max, E)
    conv_refs = [(next(it), next(it)) for _ in range(nk)]  # [(k*E, F), (1, F)] per k
    wih_ref = next(it)                                     # (D, 8H)  [fwd | bwd]
    whh_f_ref = next(it)                                   # (H, 4H)
    whh_b_ref = next(it)                                   # (H, 4H)
    bias_ref = next(it)                                    # (1, 8H)  [fwd | bwd]
    whead_f_ref = next(it)                                 # (H, C)
    whead_b_ref = next(it)                                 # (H, C)
    bhead_ref = next(it)                                   # (1, C)
    out_ref = next(it)                                     # (B, C)
    gates_scr = next(it)                                   # (T*N, 8H) scratch
    pooled_f_scr = next(it)                                # (T, 1, H) scratch
    pooled_b_scr = next(it)                                # (T, 1, H) scratch

    B, Sp, E = xpad_ref.shape
    S = Sp - 2 * pad_max
    H = whh_f_ref.shape[0]
    T, N = B, S                                            # LSTM time axis == batch

    xpad = xpad_ref[...]

    # ---- convs: one im2col matmul per kernel size over the whole batch + ReLU
    feats = []
    for k, (w_ref, cb_ref) in zip(kernel_sizes, conv_refs):
        off = pad_max - k // 2
        slab = jnp.concatenate(
            [xpad[:, off + dk:off + dk + S, :] for dk in range(k)], axis=-1
        ).reshape(B * S, k * E)                            # (B*S, k*E)
        f = jnp.dot(slab, w_ref[...], preferred_element_type=jnp.float32) + cb_ref[...]
        feats.append(jnp.maximum(f, 0.0))
    cnn = jnp.concatenate(feats, axis=-1)                  # (T*N, D)

    # ---- hoisted LSTM input projection: both directions + bias in one matmul
    gates_scr[...] = (jnp.dot(cnn, wih_ref[...], preferred_element_type=jnp.float32)
                      + bias_ref[...])                     # (T*N, 8H)

    whh_f = whh_f_ref[...]
    whh_b = whh_b_ref[...]

    def lstm_cell(g, c):
        i = jax.nn.sigmoid(g[:, 0 * H:1 * H])
        f = jax.nn.sigmoid(g[:, 1 * H:2 * H])
        gg = jnp.tanh(g[:, 2 * H:3 * H])
        o = jax.nn.sigmoid(g[:, 3 * H:4 * H])
        c_new = f * c + i * gg
        h_new = o * jnp.tanh(c_new)
        return h_new, c_new

    # ---- interleaved fwd/bwd recurrence + fused tanh / max-over-seq pooling
    def step(t, carry):
        h_f, c_f, h_b, c_b = carry
        rt = T - 1 - t
        row_f = pl.multiple_of(t * N, N)
        row_b = pl.multiple_of(rt * N, N)
        g_t = gates_scr[pl.ds(row_f, N), :]                # (N, 8H)
        g_r = gates_scr[pl.ds(row_b, N), :]                # (N, 8H)
        g_f = g_t[:, :4 * H] + jnp.dot(h_f, whh_f, preferred_element_type=jnp.float32)
        g_b = g_r[:, 4 * H:] + jnp.dot(h_b, whh_b, preferred_element_type=jnp.float32)
        h_f, c_f = lstm_cell(g_f, c_f)
        h_b, c_b = lstm_cell(g_b, c_b)
        pooled_f_scr[t] = jnp.max(jnp.tanh(h_f), axis=0, keepdims=True)   # (1, H)
        pooled_b_scr[rt] = jnp.max(jnp.tanh(h_b), axis=0, keepdims=True)  # (1, H)
        return h_f, c_f, h_b, c_b

    zeros = jnp.zeros((N, H), jnp.float32)
    jax.lax.fori_loop(0, T, step, (zeros, zeros, zeros, zeros), unroll=T <= 8)

    # ---- head: logits = pooled_f @ Wf + pooled_b @ Wb + b (no lane concat)
    pooled_f = pooled_f_scr[...].reshape(T, H)
    pooled_b = pooled_b_scr[...].reshape(T, H)
    logits = (jnp.dot(pooled_f, whead_f_ref[...], preferred_element_type=jnp.float32)
              + jnp.dot(pooled_b, whead_b_ref[...], preferred_element_type=jnp.float32)
              + bhead_ref[...])
    out_ref[...] = logits.astype(out_ref.dtype)


# ----------------------------------------------------------------------------
# Forward wrapper (embedding gather + padding are plain-JAX glue)
# ----------------------------------------------------------------------------
def clstm2_forward(kparams, input_ids, kernel_sizes):
    # TODO(synk): embedding lookup stays a plain-JAX gather (no benefit from a
    # Pallas gather at these sizes); self.dropout is identity in eval mode.
    emb = kparams["embed"][input_ids]                      # (B, S, E)
    B, S, E = emb.shape
    pad_max = max(kernel_sizes) // 2
    x_pad = jnp.pad(emb, ((0, 0), (pad_max, pad_max), (0, 0)))

    H = kparams["whh_f"].shape[0]
    C = kparams["bhead"].shape[-1]

    conv_flat = []
    for w, b in kparams["convs"]:
        conv_flat += [w, b]

    vmem = pl.BlockSpec(memory_space=pltpu.MemorySpace.VMEM)
    n_in = 1 + len(conv_flat) + 4 + 3

    return pl.pallas_call(
        functools.partial(_fused_clstm2_kernel, tuple(kernel_sizes), pad_max),
        out_shape=jax.ShapeDtypeStruct((B, C), jnp.float32),
        in_specs=[vmem] * n_in,
        out_specs=vmem,
        scratch_shapes=[
            pltpu.VMEM((B * S, 8 * H), jnp.float32),       # hoisted input-projected gates
            pltpu.VMEM((B, 1, H), jnp.float32),            # fwd tanh+max pooled rows
            pltpu.VMEM((B, 1, H), jnp.float32),            # bwd tanh+max pooled rows
        ],
    )(x_pad, *conv_flat,
      kparams["wih_cat"], kparams["whh_f"], kparams["whh_b"], kparams["b_cat"],
      kparams["whead_f"], kparams["whead_b"], kparams["bhead"])


# ----------------------------------------------------------------------------
# Deterministic parameter init (PyTorch "logical" layout) + kernel repack
# ----------------------------------------------------------------------------
def init_params(key, args):
    KK = [k + 1 if k % 2 == 0 else k for k in args["CLSTM2_kernel"]]
    E = args["CLSTM2_embed"]
    F = args["CLSTM2_filter"]
    D = args["CLSTM2_dim"] * len(args["CLSTM2_kernel"])    # LSTM input & hidden size
    H = D
    C = args["num_class"]
    assert F * len(KK) == D, "CLSTM2_filter must equal CLSTM2_dim for shapes to line up"
    for k in KK:
        assert k % 2 == 1                                  # 'same' conv requires odd k

    keys = iter(jax.random.split(key, 64))
    p = {}
    p["embed"] = 0.1 * jax.random.normal(next(keys), (args["vocab"], E), jnp.float32)

    convs = []
    for k in KK:
        s = 1.0 / math.sqrt(k * E)
        w = s * jax.random.normal(next(keys), (k, E, F), jnp.float32)
        b = s * jax.random.normal(next(keys), (F,), jnp.float32)
        convs.append((w, b))
    p["convs"] = convs

    s = 1.0 / math.sqrt(H)
    lstm = {}
    for d in ("f", "b"):
        lstm["wih_" + d] = s * jax.random.normal(next(keys), (D, 4 * H), jnp.float32)
        lstm["whh_" + d] = s * jax.random.normal(next(keys), (H, 4 * H), jnp.float32)
        # PyTorch keeps b_ih and b_hh separately; the cell only sees their sum.
        lstm["b_" + d] = s * (jax.random.normal(next(keys), (1, 4 * H), jnp.float32)
                              + jax.random.normal(next(keys), (1, 4 * H), jnp.float32))
    p["lstm"] = lstm

    sh = 1.0 / math.sqrt(2 * H)
    p["head_w"] = sh * jax.random.normal(next(keys), (2 * H, C), jnp.float32)
    p["head_b"] = sh * jax.random.normal(next(keys), (1, C), jnp.float32)
    return p, KK


def prepare_kernel_params(logical):
    """One-time repack of the logical params into the fused-kernel layout."""
    kp = {"embed": logical["embed"]}
    kp["convs"] = [(w.reshape(-1, w.shape[-1]), b.reshape(1, -1))
                   for w, b in logical["convs"]]
    lstm = logical["lstm"]
    H = lstm["whh_f"].shape[0]
    kp["wih_cat"] = jnp.concatenate([lstm["wih_f"], lstm["wih_b"]], axis=1)   # (D, 8H)
    kp["b_cat"] = jnp.concatenate([lstm["b_f"], lstm["b_b"]], axis=1)         # (1, 8H)
    kp["whh_f"] = lstm["whh_f"]
    kp["whh_b"] = lstm["whh_b"]
    kp["whead_f"] = logical["head_w"][:H]
    kp["whead_b"] = logical["head_w"][H:]
    kp["bhead"] = logical["head_b"]
    return kp


# ----------------------------------------------------------------------------
# Pure-JAX reference of the same forward (sanity check)
# ----------------------------------------------------------------------------
def clstm2_reference(logical, input_ids, kernel_sizes):
    emb = logical["embed"][input_ids]                      # (B, S, E)
    B, S, E = emb.shape
    feats = []
    for k, (w, b) in zip(kernel_sizes, logical["convs"]):
        pad = k // 2
        xp = jnp.pad(emb, ((0, 0), (pad, pad), (0, 0)))
        acc = jnp.zeros((B, S, w.shape[-1]), jnp.float32)
        for dk in range(k):
            acc = acc + jnp.einsum("bse,ef->bsf", xp[:, dk:dk + S, :], w[dk])
        feats.append(jax.nn.relu(acc + b))
    cnn = jnp.concatenate(feats, axis=-1)                  # (B, S, D)

    lp = logical["lstm"]
    H = lp["whh_f"].shape[0]
    T, N, _ = cnn.shape

    def run_direction(wih, whh, bias, reverse):
        def cell(carry, x_t):
            h, c = carry
            g = x_t @ wih + h @ whh + bias
            i = jax.nn.sigmoid(g[:, 0 * H:1 * H])
            f = jax.nn.sigmoid(g[:, 1 * H:2 * H])
            gg = jnp.tanh(g[:, 2 * H:3 * H])
            o = jax.nn.sigmoid(g[:, 3 * H:4 * H])
            c = f * c + i * gg
            h = o * jnp.tanh(c)
            return (h, c), h
        xs = cnn[::-1] if reverse else cnn
        init = (jnp.zeros((N, H), jnp.float32), jnp.zeros((N, H), jnp.float32))
        _, hs = jax.lax.scan(cell, init, xs)
        return hs[::-1] if reverse else hs

    fwd = run_direction(lp["wih_f"], lp["whh_f"], lp["b_f"][0], False)
    bwd = run_direction(lp["wih_b"], lp["whh_b"], lp["b_b"][0], True)
    out = jnp.concatenate([fwd, bwd], axis=-1)             # (B, S, 2H)
    pooled = jnp.max(jnp.tanh(out), axis=1)                # (B, 2H)
    return pooled @ logical["head_w"] + logical["head_b"][0]


if __name__ == "__main__":
    args = dict(
        vocab=100,
        CLSTM2_embed=16,
        CLSTM2_kernel=[3, 5],
        CLSTM2_filter=8,      # must equal CLSTM2_dim for the reference shapes to line up
        CLSTM2_dim=8,
        CLSTM2_lstm_layer=1,
        dropout=0.1,
        num_class=4,
    )
    key = jax.random.PRNGKey(0)
    pkey, dkey = jax.random.split(key)
    logical, KK = init_params(pkey, args)
    kparams = prepare_kernel_params(logical)

    B, S = 2, 16
    input_ids = jax.random.randint(dkey, (B, S), 0, args["vocab"], dtype=jnp.int32)

    fused_forward = jax.jit(functools.partial(clstm2_forward, kernel_sizes=tuple(KK)))
    logits = jax.block_until_ready(fused_forward(kparams, input_ids))

    assert logits.shape == (B, args["num_class"]), logits.shape
    assert bool(jnp.all(jnp.isfinite(logits)))

    # sanity check vs. pure-JAX reference (tolerance covers the TPU MXU's
    # reduced-precision f32 matmul passes)
    ref = clstm2_reference(logical, input_ids, KK)
    assert jnp.allclose(logits, ref, atol=2e-2, rtol=2e-2), (logits, ref)

    print("KERNEL_OK")
</pallas_src>

<mosaic_0001>
module attributes {stable_mosaic.version = 11 : i64} {
  func.func @_fused_clstm2_kernel(%arg0: memref<2x20x16xf32, #tpu.memory_space<vmem>>, %arg1: memref<48x8xf32, #tpu.memory_space<vmem>>, %arg2: memref<1x8xf32, #tpu.memory_space<vmem>>, %arg3: memref<80x8xf32, #tpu.memory_space<vmem>>, %arg4: memref<1x8xf32, #tpu.memory_space<vmem>>, %arg5: memref<16x128xf32, #tpu.memory_space<vmem>>, %arg6: memref<16x64xf32, #tpu.memory_space<vmem>>, %arg7: memref<16x64xf32, #tpu.memory_space<vmem>>, %arg8: memref<1x128xf32, #tpu.memory_space<vmem>>, %arg9: memref<16x4xf32, #tpu.memory_space<vmem>>, %arg10: memref<16x4xf32, #tpu.memory_space<vmem>>, %arg11: memref<1x4xf32, #tpu.memory_space<vmem>>, %arg12: memref<2x4xf32, #tpu.memory_space<vmem>>, %arg13: memref<32x128xf32, #tpu.memory_space<vmem>>, %arg14: memref<2x1x16xf32, #tpu.memory_space<vmem>>, %arg15: memref<2x1x16xf32, #tpu.memory_space<vmem>>) attributes {dimension_semantics = [], scalar_prefetch = 0 : i64, scratch_operands = 3 : i64, tpu.core_type = #tpu.core_type<tc>} {
    %c0 = arith.constant 0 : index
    %c0_0 = arith.constant 0 : index
    %c0_1 = arith.constant 0 : index
    %0 = vector.load %arg0[%c0, %c0_0, %c0_1] : memref<2x20x16xf32, #tpu.memory_space<vmem>>, vector<2x20x16xf32>
    %1 = vector.extract_strided_slice %0 {offsets = [0, 1, 0], sizes = [2, 16, 16], strides = [1, 1, 1]} : vector<2x20x16xf32> to vector<2x16x16xf32>
    %2 = vector.extract_strided_slice %0 {offsets = [0, 2, 0], sizes = [2, 16, 16], strides = [1, 1, 1]} : vector<2x20x16xf32> to vector<2x16x16xf32>
    %3 = vector.extract_strided_slice %0 {offsets = [0, 3, 0], sizes = [2, 16, 16], strides = [1, 1, 1]} : vector<2x20x16xf32> to vector<2x16x16xf32>
    %4 = tpu.concatenate %1, %2, %3 in 2 : vector<2x16x16xf32>, vector<2x16x16xf32>, vector<2x16x16xf32> -> vector<2x16x48xf32>
    %5 = vector.shape_cast %4 : vector<2x16x48xf32> to vector<32x48xf32>
    %c0_2 = arith.constant 0 : index
    %c0_3 = arith.constant 0 : index
    %6 = vector.load %arg1[%c0_2, %c0_3] : memref<48x8xf32, #tpu.memory_space<vmem>>, vector<48x8xf32>
    %cst = arith.constant dense<0.000000e+00> : vector<32x8xf32>
    %7 = tpu.matmul %5, %6, %cst {dimension_numbers = #tpu.dot_dimension_numbers<[1], [0], [0], [1], [0, 0, 1, 1], [], []>} : vector<32x48xf32>, vector<48x8xf32>, vector<32x8xf32> -> vector<32x8xf32>
    %c0_4 = arith.constant 0 : index
    %c0_5 = arith.constant 0 : index
    %8 = vector.load %arg2[%c0_4, %c0_5] : memref<1x8xf32, #tpu.memory_space<vmem>>, vector<1x8xf32>
    %9 = vector.broadcast %8 : vector<1x8xf32> to vector<32x8xf32>
    %10 = arith.addf %7, %9 : vector<32x8xf32>
    %cst_6 = arith.constant 0.000000e+00 : f32
    %11 = vector.broadcast %cst_6 : f32 to vector<32x8xf32>
    %12 = arith.maximumf %10, %11 : vector<32x8xf32>
    %13 = vector.extract_strided_slice %0 {offsets = [0, 0, 0], sizes = [2, 16, 16], strides = [1, 1, 1]} : vector<2x20x16xf32> to vector<2x16x16xf32>
    %14 = vector.extract_strided_slice %0 {offsets = [0, 1, 0], sizes = [2, 16, 16], strides = [1, 1, 1]} : vector<2x20x16xf32> to vector<2x16x16xf32>
    %15 = vector.extract_strided_slice %0 {offsets = [0, 2, 0], sizes = [2, 16, 16], strides = [1, 1, 1]} : vector<2x20x16xf32> to vector<2x16x16xf32>
    %16 = vector.extract_strided_slice %0 {offsets = [0, 3, 0], sizes = [2, 16, 16], strides = [1, 1, 1]} : vector<2x20x16xf32> to vector<2x16x16xf32>
    %17 = vector.extract_strided_slice %0 {offsets = [0, 4, 0], sizes = [2, 16, 16], strides = [1, 1, 1]} : vector<2x20x16xf32> to vector<2x16x16xf32>
    %18 = tpu.concatenate %13, %14, %15, %16, %17 in 2 : vector<2x16x16xf32>, vector<2x16x16xf32>, vector<2x16x16xf32>, vector<2x16x16xf32>, vector<2x16x16xf32> -> vector<2x16x80xf32>
    %19 = vector.shape_cast %18 : vector<2x16x80xf32> to vector<32x80xf32>
    %c0_7 = arith.constant 0 : index
    %c0_8 = arith.constant 0 : index
    %20 = vector.load %arg3[%c0_7, %c0_8] : memref<80x8xf32, #tpu.memory_space<vmem>>, vector<80x8xf32>
    %cst_9 = arith.constant dense<0.000000e+00> : vector<32x8xf32>
    %21 = tpu.matmul %19, %20, %cst_9 {dimension_numbers = #tpu.dot_dimension_numbers<[1], [0], [0], [1], [0, 0, 1, 1], [], []>} : vector<32x80xf32>, vector<80x8xf32>, vector<32x8xf32> -> vector<32x8xf32>
    %c0_10 = arith.constant 0 : index
    %c0_11 = arith.constant 0 : index
    %22 = vector.load %arg4[%c0_10, %c0_11] : memref<1x8xf32, #tpu.memory_space<vmem>>, vector<1x8xf32>
    %23 = vector.broadcast %22 : vector<1x8xf32> to vector<32x8xf32>
    %24 = arith.addf %21, %23 : vector<32x8xf32>
    %cst_12 = arith.constant 0.000000e+00 : f32
    %25 = vector.broadcast %cst_12 : f32 to vector<32x8xf32>
    %26 = arith.maximumf %24, %25 : vector<32x8xf32>
    %27 = tpu.concatenate %12, %26 in 1 : vector<32x8xf32>, vector<32x8xf32> -> vector<32x16xf32>
    %c0_13 = arith.constant 0 : index
    %c0_14 = arith.constant 0 : index
    %28 = vector.load %arg5[%c0_13, %c0_14] : memref<16x128xf32, #tpu.memory_space<vmem>>, vector<16x128xf32>
    %cst_15 = arith.constant dense<0.000000e+00> : vector<32x128xf32>
    %29 = tpu.matmul %27, %28, %cst_15 {dimension_numbers = #tpu.dot_dimension_numbers<[1], [0], [0], [1], [0, 0, 1, 1], [], []>} : vector<32x16xf32>, vector<16x128xf32>, vector<32x128xf32> -> vector<32x128xf32>
    %c0_16 = arith.constant 0 : index
    %c0_17 = arith.constant 0 : index
    %30 = vector.load %arg8[%c0_16, %c0_17] : memref<1x128xf32, #tpu.memory_space<vmem>>, vector<1x128xf32>
    %31 = vector.broadcast %30 : vector<1x128xf32> to vector<32x128xf32>
    %32 = arith.addf %29, %31 : vector<32x128xf32>
    %c0_18 = arith.constant 0 : index
    %c0_19 = arith.constant 0 : index
    %33 = vector.load %arg13[%c0_18, %c0_19] : memref<32x128xf32, #tpu.memory_space<vmem>>, vector<32x128xf32>
    tpu.vector_store %arg13[%c0_18, %c0_19], %32 {strides = array<i32>} : memref<32x128xf32, #tpu.memory_space<vmem>>, vector<32x128xf32>,
    %c0_20 = arith.constant 0 : index
    %c0_21 = arith.constant 0 : index
    %34 = vector.load %arg6[%c0_20, %c0_21] : memref<16x64xf32, #tpu.memory_space<vmem>>, vector<16x64xf32>
    %c0_22 = arith.constant 0 : index
    %c0_23 = arith.constant 0 : index
    %35 = vector.load %arg7[%c0_22, %c0_23] : memref<16x64xf32, #tpu.memory_space<vmem>>, vector<16x64xf32>
    %cst_24 = arith.constant 0.000000e+00 : f32
    %36 = vector.broadcast %cst_24 : f32 to vector<16x16xf32>
    %c0_i32 = arith.constant 0 : i32
    %c1_i32 = arith.constant 1 : i32
    %37 = arith.subi %c1_i32, %c0_i32 : i32
    %c16_i32 = arith.constant 16 : i32
    %38 = arith.muli %c0_i32, %c16_i32 : i32
    %39 = tpu.assume_multiple %38, 16 : i32
    %c16_i32_25 = arith.constant 16 : i32
    %40 = arith.muli %37, %c16_i32_25 : i32
    %41 = tpu.assume_multiple %40, 16 : i32
    %42 = arith.index_cast %39 : i32 to index
    %c0_26 = arith.constant 0 : index
    %43 = vector.load %arg13[%42, %c0_26] : memref<32x128xf32, #tpu.memory_space<vmem>>, vector<16x128xf32>
    %44 = arith.index_cast %41 : i32 to index
    %c0_27 = arith.constant 0 : index
    %45 = vector.load %arg13[%44, %c0_27] : memref<32x128xf32, #tpu.memory_space<vmem>>, vector<16x128xf32>
    %46 = vector.extract_strided_slice %43 {offsets = [0, 0], sizes = [16, 64], strides = [1, 1]} : vector<16x128xf32> to vector<16x64xf32>
    %cst_28 = arith.constant dense<0.000000e+00> : vector<16x64xf32>
    %47 = tpu.matmul %36, %34, %cst_28 {dimension_numbers = #tpu.dot_dimension_numbers<[1], [0], [0], [1], [0, 0, 1, 1], [], []>} : vector<16x16xf32>, vector<16x64xf32>, vector<16x64xf32> -> vector<16x64xf32>
    %48 = arith.addf %46, %47 : vector<16x64xf32>
    %49 = vector.extract_strided_slice %45 {offsets = [0, 64], sizes = [16, 64], strides = [1, 1]} : vector<16x128xf32> to vector<16x64xf32>
    %cst_29 = arith.constant dense<0.000000e+00> : vector<16x64xf32>
    %50 = tpu.matmul %36, %35, %cst_29 {dimension_numbers = #tpu.dot_dimension_numbers<[1], [0], [0], [1], [0, 0, 1, 1], [], []>} : vector<16x16xf32>, vector<16x64xf32>, vector<16x64xf32> -> vector<16x64xf32>
    %51 = arith.addf %49, %50 : vector<16x64xf32>
    %52 = vector.extract_strided_slice %48 {offsets = [0, 0], sizes = [16, 16], strides = [1, 1]} : vector<16x64xf32> to vector<16x16xf32>
    %53 = arith.negf %52 : vector<16x16xf32>
    %54 = math.exp %53 : vector<16x16xf32>
    %cst_30 = arith.constant 1.000000e+00 : f32
    %55 = vector.broadcast %cst_30 : f32 to vector<16x16xf32>
    %56 = arith.addf %55, %54 : vector<16x16xf32>
    %57 = arith.divf %55, %56 : vector<16x16xf32>
    %58 = vector.extract_strided_slice %48 {offsets = [0, 16], sizes = [16, 16], strides = [1, 1]} : vector<16x64xf32> to vector<16x16xf32>
    %59 = arith.negf %58 : vector<16x16xf32>
    %60 = math.exp %59 : vector<16x16xf32>
    %cst_31 = arith.constant 1.000000e+00 : f32
    %61 = vector.broadcast %cst_31 : f32 to vector<16x16xf32>
    %62 = arith.addf %61, %60 : vector<16x16xf32>
    %63 = arith.divf %61, %62 : vector<16x16xf32>
    %64 = vector.extract_strided_slice %48 {offsets = [0, 32], sizes = [16, 16], strides = [1, 1]} : vector<16x64xf32> to vector<16x16xf32>
    %65 = math.tanh %64 : vector<16x16xf32>
    %66 = vector.extract_strided_slice %48 {offsets = [0, 48], sizes = [16, 16], strides = [1, 1]} : vector<16x64xf32> to vector<16x16xf32>
    %67 = arith.negf %66 : vector<16x16xf32>
    %68 = math.exp %67 : vector<16x16xf32>
    %cst_32 = arith.constant 1.000000e+00 : f32
    %69 = vector.broadcast %cst_32 : f32 to vector<16x16xf32>
    %70 = arith.addf %69, %68 : vector<16x16xf32>
    %71 = arith.divf %69, %70 : vector<16x16xf32>
    %72 = arith.mulf %63, %36 : vector<16x16xf32>
    %73 = arith.mulf %57, %65 : vector<16x16xf32>
    %74 = arith.addf %72, %73 : vector<16x16xf32>
    %75 = math.tanh %74 : vector<16x16xf32>
    %76 = arith.mulf %71, %75 : vector<16x16xf32>
    %77 = vector.extract_strided_slice %51 {offsets = [0, 0], sizes = [16, 16], strides = [1, 1]} : vector<16x64xf32> to vector<16x16xf32>
    %78 = arith.negf %77 : vector<16x16xf32>
    %79 = math.exp %78 : vector<16x16xf32>
    %cst_33 = arith.constant 1.000000e+00 : f32
    %80 = vector.broadcast %cst_33 : f32 to vector<16x16xf32>
    %81 = arith.addf %80, %79 : vector<16x16xf32>
    %82 = arith.divf %80, %81 : vector<16x16xf32>
    %83 = vector.extract_strided_slice %51 {offsets = [0, 16], sizes = [16, 16], strides = [1, 1]} : vector<16x64xf32> to vector<16x16xf32>
    %84 = arith.negf %83 : vector<16x16xf32>
    %85 = math.exp %84 : vector<16x16xf32>
    %cst_34 = arith.constant 1.000000e+00 : f32
    %86 = vector.broadcast %cst_34 : f32 to vector<16x16xf32>
    %87 = arith.addf %86, %85 : vector<16x16xf32>
    %88 = arith.divf %86, %87 : vector<16x16xf32>
    %89 = vector.extract_strided_slice %51 {offsets = [0, 32], sizes = [16, 16], strides = [1, 1]} : vector<16x64xf32> to vector<16x16xf32>
    %90 = math.tanh %89 : vector<16x16xf32>
    %91 = vector.extract_strided_slice %51 {offsets = [0, 48], sizes = [16, 16], strides = [1, 1]} : vector<16x64xf32> to vector<16x16xf32>
    %92 = arith.negf %91 : vector<16x16xf32>
    %93 = math.exp %92 : vector<16x16xf32>
    %cst_35 = arith.constant 1.000000e+00 : f32
    %94 = vector.broadcast %cst_35 : f32 to vector<16x16xf32>
    %95 = arith.addf %94, %93 : vector<16x16xf32>
    %96 = arith.divf %94, %95 : vector<16x16xf32>
    %97 = arith.mulf %88, %36 : vector<16x16xf32>
    %98 = arith.mulf %82, %90 : vector<16x16xf32>
    %99 = arith.addf %97, %98 : vector<16x16xf32>
    %100 = math.tanh %99 : vector<16x16xf32>
    %101 = arith.mulf %96, %100 : vector<16x16xf32>
    %102 = math.tanh %76 : vector<16x16xf32>
    %cst_36 = arith.constant dense<0xFF800000> : vector<16xf32>
    %103 = vector.multi_reduction <maximumf>, %102, %cst_36 [0] : vector<16x16xf32> to vector<16xf32>
    %104 = vector.shape_cast %103 : vector<16xf32> to vector<1x16xf32>
    %105 = arith.index_cast %c0_i32 : i32 to index
    %c0_37 = arith.constant 0 : index
    %c0_38 = arith.constant 0 : index
    %106 = vector.load %arg14[%105, %c0_37, %c0_38] : memref<2x1x16xf32, #tpu.memory_space<vmem>>, vector<1x1x16xf32>
    %107 = vector.shape_cast %106 : vector<1x1x16xf32> to vector<1x16xf32>
    %108 = vector.shape_cast %104 : vector<1x16xf32> to vector<1x1x16xf32>
    tpu.vector_store %arg14[%105, %c0_37, %c0_38], %108 {strides = array<i32>} : memref<2x1x16xf32, #tpu.memory_space<vmem>>, vector<1x1x16xf32>,
    %109 = math.tanh %101 : vector<16x16xf32>
    %cst_39 = arith.constant dense<0xFF800000> : vector<16xf32>
    %110 = vector.multi_reduction <maximumf>, %109, %cst_39 [0] : vector<16x16xf32> to vector<16xf32>
    %111 = vector.shape_cast %110 : vector<16xf32> to vector<1x16xf32>
    %112 = arith.index_cast %37 : i32 to index
    %c0_40 = arith.constant 0 : index
    %c0_41 = arith.constant 0 : index
    %113 = vector.load %arg15[%112, %c0_40, %c0_41] : memref<2x1x16xf32, #tpu.memory_space<vmem>>, vector<1x1x16xf32>
    %114 = vector.shape_cast %113 : vector<1x1x16xf32> to vector<1x16xf32>
    %115 = vector.shape_cast %111 : vector<1x16xf32> to vector<1x1x16xf32>
    tpu.vector_store %arg15[%112, %c0_40, %c0_41], %115 {strides = array<i32>} : memref<2x1x16xf32, #tpu.memory_space<vmem>>, vector<1x1x16xf32>,
    %c1_i32_42 = arith.constant 1 : i32
    %c1_i32_43 = arith.constant 1 : i32
    %116 = arith.subi %c1_i32_43, %c1_i32_42 : i32
    %c16_i32_44 = arith.constant 16 : i32
    %117 = arith.muli %c1_i32_42, %c16_i32_44 : i32
    %118 = tpu.assume_multiple %117, 16 : i32
    %c16_i32_45 = arith.constant 16 : i32
    %119 = arith.muli %116, %c16_i32_45 : i32
    %120 = tpu.assume_multiple %119, 16 : i32
    %121 = arith.index_cast %118 : i32 to index
    %c0_46 = arith.constant 0 : index
    %122 = vector.load %arg13[%121, %c0_46] : memref<32x128xf32, #tpu.memory_space<vmem>>, vector<16x128xf32>
    %123 = arith.index_cast %120 : i32 to index
    %c0_47 = arith.constant 0 : index
    %124 = vector.load %arg13[%123, %c0_47] : memref<32x128xf32, #tpu.memory_space<vmem>>, vector<16x128xf32>
    %125 = vector.extract_strided_slice %122 {offsets = [0, 0], sizes = [16, 64], strides = [1, 1]} : vector<16x128xf32> to vector<16x64xf32>
    %cst_48 = arith.constant dense<0.000000e+00> : vector<16x64xf32>
    %126 = tpu.matmul %76, %34, %cst_48 {dimension_numbers = #tpu.dot_dimension_numbers<[1], [0], [0], [1], [0, 0, 1, 1], [], []>} : vector<16x16xf32>, vector<16x64xf32>, vector<16x64xf32> -> vector<16x64xf32>
    %127 = arith.addf %125, %126 : vector<16x64xf32>
    %128 = vector.extract_strided_slice %124 {offsets = [0, 64], sizes = [16, 64], strides = [1, 1]} : vector<16x128xf32> to vector<16x64xf32>
    %cst_49 = arith.constant dense<0.000000e+00> : vector<16x64xf32>
    %129 = tpu.matmul %101, %35, %cst_49 {dimension_numbers = #tpu.dot_dimension_numbers<[1], [0], [0], [1], [0, 0, 1, 1], [], []>} : vector<16x16xf32>, vector<16x64xf32>, vector<16x64xf32> -> vector<16x64xf32>
    %130 = arith.addf %128, %129 : vector<16x64xf32>
    %131 = vector.extract_strided_slice %127 {offsets = [0, 0], sizes = [16, 16], strides = [1, 1]} : vector<16x64xf32> to vector<16x16xf32>
    %132 = arith.negf %131 : vector<16x16xf32>
    %133 = math.exp %132 : vector<16x16xf32>
    %cst_50 = arith.constant 1.000000e+00 : f32
    %134 = vector.broadcast %cst_50 : f32 to vector<16x16xf32>
    %135 = arith.addf %134, %133 : vector<16x16xf32>
    %136 = arith.divf %134, %135 : vector<16x16xf32>
    %137 = vector.extract_strided_slice %127 {offsets = [0, 16], sizes = [16, 16], strides = [1, 1]} : vector<16x64xf32> to vector<16x16xf32>
    %138 = arith.negf %137 : vector<16x16xf32>
    %139 = math.exp %138 : vector<16x16xf32>
    %cst_51 = arith.constant 1.000000e+00 : f32
    %140 = vector.broadcast %cst_51 : f32 to vector<16x16xf32>
    %141 = arith.addf %140, %139 : vector<16x16xf32>
    %142 = arith.divf %140, %141 : vector<16x16xf32>
    %143 = vector.extract_strided_slice %127 {offsets = [0, 32], sizes = [16, 16], strides = [1, 1]} : vector<16x64xf32> to vector<16x16xf32>
    %144 = math.tanh %143 : vector<16x16xf32>
    %145 = vector.extract_strided_slice %127 {offsets = [0, 48], sizes = [16, 16], strides = [1, 1]} : vector<16x64xf32> to vector<16x16xf32>
    %146 = arith.negf %145 : vector<16x16xf32>
    %147 = math.exp %146 : vector<16x16xf32>
    %cst_52 = arith.constant 1.000000e+00 : f32
    %148 = vector.broadcast %cst_52 : f32 to vector<16x16xf32>
    %149 = arith.addf %148, %147 : vector<16x16xf32>
    %150 = arith.divf %148, %149 : vector<16x16xf32>
    %151 = arith.mulf %142, %74 : vector<16x16xf32>
    %152 = arith.mulf %136, %144 : vector<16x16xf32>
    %153 = arith.addf %151, %152 : vector<16x16xf32>
    %154 = math.tanh %153 : vector<16x16xf32>
    %155 = arith.mulf %150, %154 : vector<16x16xf32>
    %156 = vector.extract_strided_slice %130 {offsets = [0, 0], sizes = [16, 16], strides = [1, 1]} : vector<16x64xf32> to vector<16x16xf32>
    %157 = arith.negf %156 : vector<16x16xf32>
    %158 = math.exp %157 : vector<16x16xf32>
    %cst_53 = arith.constant 1.000000e+00 : f32
    %159 = vector.broadcast %cst_53 : f32 to vector<16x16xf32>
    %160 = arith.addf %159, %158 : vector<16x16xf32>
    %161 = arith.divf %159, %160 : vector<16x16xf32>
    %162 = vector.extract_strided_slice %130 {offsets = [0, 16], sizes = [16, 16], strides = [1, 1]} : vector<16x64xf32> to vector<16x16xf32>
    %163 = arith.negf %162 : vector<16x16xf32>
    %164 = math.exp %163 : vector<16x16xf32>
    %cst_54 = arith.constant 1.000000e+00 : f32
    %165 = vector.broadcast %cst_54 : f32 to vector<16x16xf32>
    %166 = arith.addf %165, %164 : vector<16x16xf32>
    %167 = arith.divf %165, %166 : vector<16x16xf32>
    %168 = vector.extract_strided_slice %130 {offsets = [0, 32], sizes = [16, 16], strides = [1, 1]} : vector<16x64xf32> to vector<16x16xf32>
    %169 = math.tanh %168 : vector<16x16xf32>
    %170 = vector.extract_strided_slice %130 {offsets = [0, 48], sizes = [16, 16], strides = [1, 1]} : vector<16x64xf32> to vector<16x16xf32>
    %171 = arith.negf %170 : vector<16x16xf32>
    %172 = math.exp %171 : vector<16x16xf32>
    %cst_55 = arith.constant 1.000000e+00 : f32
    %173 = vector.broadcast %cst_55 : f32 to vector<16x16xf32>
    %174 = arith.addf %173, %172 : vector<16x16xf32>
    %175 = arith.divf %173, %174 : vector<16x16xf32>
    %176 = arith.mulf %167, %99 : vector<16x16xf32>
    %177 = arith.mulf %161, %169 : vector<16x16xf32>
    %178 = arith.addf %176, %177 : vector<16x16xf32>
    %179 = math.tanh %178 : vector<16x16xf32>
    %180 = arith.mulf %175, %179 : vector<16x16xf32>
    %181 = math.tanh %155 : vector<16x16xf32>
    %cst_56 = arith.constant dense<0xFF800000> : vector<16xf32>
    %182 = vector.multi_reduction <maximumf>, %181, %cst_56 [0] : vector<16x16xf32> to vector<16xf32>
    %183 = vector.shape_cast %182 : vector<16xf32> to vector<1x16xf32>
    %184 = arith.index_cast %c1_i32_42 : i32 to index
    %c0_57 = arith.constant 0 : index
    %c0_58 = arith.constant 0 : index
    %185 = vector.load %arg14[%184, %c0_57, %c0_58] : memref<2x1x16xf32, #tpu.memory_space<vmem>>, vector<1x1x16xf32>
    %186 = vector.shape_cast %185 : vector<1x1x16xf32> to vector<1x16xf32>
    %187 = vector.shape_cast %183 : vector<1x16xf32> to vector<1x1x16xf32>
    tpu.vector_store %arg14[%184, %c0_57, %c0_58], %187 {strides = array<i32>} : memref<2x1x16xf32, #tpu.memory_space<vmem>>, vector<1x1x16xf32>,
    %188 = math.tanh %180 : vector<16x16xf32>
    %cst_59 = arith.constant dense<0xFF800000> : vector<16xf32>
    %189 = vector.multi_reduction <maximumf>, %188, %cst_59 [0] : vector<16x16xf32> to vector<16xf32>
    %190 = vector.shape_cast %189 : vector<16xf32> to vector<1x16xf32>
    %191 = arith.index_cast %116 : i32 to index
    %c0_60 = arith.constant 0 : index
    %c0_61 = arith.constant 0 : index
    %192 = vector.load %arg15[%191, %c0_60, %c0_61] : memref<2x1x16xf32, #tpu.memory_space<vmem>>, vector<1x1x16xf32>
    %193 = vector.shape_cast %192 : vector<1x1x16xf32> to vector<1x16xf32>
    %194 = vector.shape_cast %190 : vector<1x16xf32> to vector<1x1x16xf32>
    tpu.vector_store %arg15[%191, %c0_60, %c0_61], %194 {strides = array<i32>} : memref<2x1x16xf32, #tpu.memory_space<vmem>>, vector<1x1x16xf32>,
    %c2_i32 = arith.constant 2 : i32
    %c0_62 = arith.constant 0 : index
    %c0_63 = arith.constant 0 : index
    %c0_64 = arith.constant 0 : index
    %195 = vector.load %arg14[%c0_62, %c0_63, %c0_64] : memref<2x1x16xf32, #tpu.memory_space<vmem>>, vector<2x1x16xf32>
    %196 = vector.shape_cast %195 : vector<2x1x16xf32> to vector<2x16xf32>
    %c0_65 = arith.constant 0 : index
    %c0_66 = arith.constant 0 : index
    %c0_67 = arith.constant 0 : index
    %197 = vector.load %arg15[%c0_65, %c0_66, %c0_67] : memref<2x1x16xf32, #tpu.memory_space<vmem>>, vector<2x1x16xf32>
    %198 = vector.shape_cast %197 : vector<2x1x16xf32> to vector<2x16xf32>
    %c0_68 = arith.constant 0 : index
    %c0_69 = arith.constant 0 : index
    %199 = vector.load %arg9[%c0_68, %c0_69] : memref<16x4xf32, #tpu.memory_space<vmem>>, vector<16x4xf32>
    %cst_70 = arith.constant dense<0.000000e+00> : vector<2x4xf32>
    %200 = tpu.matmul %196, %199, %cst_70 {dimension_numbers = #tpu.dot_dimension_numbers<[1], [0], [0], [1], [0, 0, 1, 1], [], []>} : vector<2x16xf32>, vector<16x4xf32>, vector<2x4xf32> -> vector<2x4xf32>
    %c0_71 = arith.constant 0 : index
    %c0_72 = arith.constant 0 : index
    %201 = vector.load %arg10[%c0_71, %c0_72] : memref<16x4xf32, #tpu.memory_space<vmem>>, vector<16x4xf32>
    %cst_73 = arith.constant dense<0.000000e+00> : vector<2x4xf32>
    %202 = tpu.matmul %198, %201, %cst_73 {dimension_numbers = #tpu.dot_dimension_numbers<[1], [0], [0], [1], [0, 0, 1, 1], [], []>} : vector<2x16xf32>, vector<16x4xf32>, vector<2x4xf32> -> vector<2x4xf32>
    %203 = arith.addf %200, %202 : vector<2x4xf32>
    %c0_74 = arith.constant 0 : index
    %c0_75 = arith.constant 0 : index
    %204 = vector.load %arg11[%c0_74, %c0_75] : memref<1x4xf32, #tpu.memory_space<vmem>>, vector<1x4xf32>
    %205 = vector.broadcast %204 : vector<1x4xf32> to vector<2x4xf32>
    %206 = arith.addf %203, %205 : vector<2x4xf32>
    %c0_76 = arith.constant 0 : index
    %c0_77 = arith.constant 0 : index
    %207 = vector.load %arg12[%c0_76, %c0_77] : memref<2x4xf32, #tpu.memory_space<vmem>>, vector<2x4xf32>
    tpu.vector_store %arg12[%c0_76, %c0_77], %206 {strides = array<i32>} : memref<2x4xf32, #tpu.memory_space<vmem>>, vector<2x4xf32>,
    return
  }
}

</mosaic_0001>

<bundles_post_ra>
// kernel: clstm2_forward.1
= control target key start
LH: loop header
LB: loop body
LE: loop exit
PB: predicated region body
PF: predicated region fallthrough
CT: control target
= control target key end

     0   :  { %vm83_vm0 = vcmask 1045504   ;;  %vm54_vm1 = vcmask 1046528   ;;  %s1680_s27 = smov 32   ;;  %s1681_s28 = smov 16   ;;  %vm253_vm2 = vcmask 1044480   ;;  %s2121_s0 = inlined_call_operand.vmem [shape: f32[2,20,16], index: 0, kind: input, shape index: {}]   ;;  %s2122_s1 = inlined_call_operand.vmem [shape: f32[48,8], index: 1, kind: input, shape index: {}]   ;;  %s2123_s2 = inlined_call_operand.vmem [shape: f32[1,8], index: 2, kind: input, shape index: {}]   ;;  %s2124_s3 = inlined_call_operand.vmem [shape: f32[80,8], index: 3, kind: input, shape index: {}]   ;;  %s2125_s4 = inlined_call_operand.vmem [shape: f32[1,8], index: 4, kind: input, shape index: {}]   ;;  %s2126_s5 = inlined_call_operand.vmem [shape: f32[16,128], index: 5, kind: input, shape index: {}]   ;;  %s2127_s6 = inlined_call_operand.vmem [shape: f32[16,64], index: 6, kind: input, shape index: {}]   ;;  %s2128_s7 = inlined_call_operand.vmem [shape: f32[16,64], index: 7, kind: input, shape index: {}]   ;;  %s2129_s8 = inlined_call_operand.vmem [shape: f32[1,128], index: 8, kind: input, shape index: {}]   ;;  %s2130_s9 = inlined_call_operand.vmem [shape: f32[16,4], index: 9, kind: input, shape index: {}]   ;;  %s2131_s10 = inlined_call_operand.vmem [shape: f32[16,4], index: 10, kind: input, shape index: {}]   ;;  %s2132_s11 = inlined_call_operand.vmem [shape: f32[1,4], index: 11, kind: input, shape index: {}]   ;;  %s2133_s12 = inlined_call_operand.hbm [shape: f32[2,4], index: 12, kind: output, shape index: {}]  }
   0x1   :  { %v1759_v0 = vld [vmem:[%s2121_s0] sm:$0xff]  ;;  %v1764_v1 = vld [vmem:[%s2121_s0 + $0x8] sm:$0xff]  ;;  %v1773_v6 = vld [vmem:[%s2121_s0 + $0x10] sm:$0xf] }
   0x2   :  { %v84_v2 = vrot.slane %v1759_v0, 2  ;;  %v85_v3 = vrot.slane %v1764_v1, 2  ;;  %v55_v4 = vrot.slane %v1759_v0, 1  ;;  %v56_v5 = vrot.slane %v1764_v1, 1  ;;  %v317_v12 = vld [vmem:[%s2124_s3 + $0x48] sm:$0xff]  ;;  %v316_v13 = vld [vmem:[%s2124_s3 + $0x40] sm:$0xff] }
   0x3   :  { %v87_v7 = vrot.slane %v1773_v6, 2  ;;  %v58_v8 = vrot.slane %v1773_v6, 1  ;;  %v255_v11 = vrot.slane %v1764_v1, 3  ;;  %v257_v16 = vrot.slane %v1773_v6, 3  ;;  %v1799_v18 = vld [vmem:[%s2121_s0 + $0x18] sm:$0xff]  ;;  %v1804_v19 = vld [vmem:[%s2121_s0 + $0x20] sm:$0xff]  ;;  %1489 = vmatprep.subr.mxu1 %v317_v12 }
   0x4   :  { %v86_v9 = vsel %vm83_vm0, %v84_v2, %v85_v3  ;;  %v57_v10 = vsel %vm54_vm1, %v55_v4, %v56_v5  ;;  %v254_v17 = vrot.slane %v1759_v0, 3  ;;  %1490 = vmatpush3.msra.mxu1 %v317_v12  ;;  %v315_v20 = vld [vmem:[%s2124_s3 + $0x38] sm:$0xff]  ;;  %v60_v21 = vrot.slane %v1799_v18, 1 }
   0x5   :  { %94 = vrot.lane.b32.xlu1 %v86_v9, %s1680_s27  ;;  %65 = vrot.lane.b32.xlu0 %v57_v10, %s1681_s28  ;;  %v88_v14 = vsel %vm83_vm0, %v85_v3, %v87_v7  ;;  %v59_v15 = vsel %vm54_vm1, %v56_v5, %v58_v8  ;;  %v61_v22 = vrot.slane %v1804_v19, 1 }
   0x6   :  { %1491 = vmatprep.subr.mxu1 %v316_v13 }
   0x9   :  { %96 = vrot.lane.b32.xlu1 %v88_v14, %s1680_s27  ;;  %67 = vrot.lane.b32.xlu0 %v59_v15, %s1681_s28 }
   0xa   :  { %17 = vsyncpa [#allocation6], 0  ;;  %v258_v23 = vsel %vm253_vm2, %v255_v11, %v257_v16  ;;  %v256_v24 = vsel %vm253_vm2, %v254_v17, %v255_v11  ;;  %v277_v25 = vrot.slane %v1759_v0, 4  ;;  %v278_v26 = vrot.slane %v1764_v1, 4  ;;  %1492 = vmatpush3.msra.mxu1 %v316_v13  ;;  %v1820_v27 = vld [vmem:[%s2121_s0 + $0x28] sm:$0xf] }
   0xb   :  { %vm276_vm3 = vcmask 1043456   ;;  %1493 = vmatprep.subr.mxu1 %v315_v20  ;;  %v314_v28 = vld [vmem:[%s2124_s3 + $0x30] sm:$0xff]  ;;  %s1682_s25 = smov 48   ;;  %v313_v29 = vld [vmem:[%s2124_s3 + $0x28] sm:$0xff]  ;;  %v62_v30 = vsel %vm54_vm1, %v60_v21, %v61_v22  ;;  %v63_v32 = vrot.slane %v1820_v27, 1  ;;  %v280_v33 = vrot.slane %v1773_v6, 4 }
   0xc   :  { %1494 = vmatpush3.msra.mxu1 %v315_v20  ;;  %v279_v31 = vsel %vm276_vm3, %v277_v25, %v278_v26  ;;  %v312_v34 = vld [vmem:[%s2124_s3 + $0x20] sm:$0xff]  ;;  %v147_v35 = vld [vmem:[%s2122_s1 + $0x28] sm:$0xff]  ;;  %s1683_s15 = smov 64   ;;  %v90_v36 = vrot.slane %v1804_v19, 2  ;;  %v92_v40 = vrot.slane %v1820_v27, 2  ;;  %v89_v41 = vrot.slane %v1799_v18, 2 }
   0xd   :  { %266 = vrot.lane.b32.xlu1 %v258_v23, %s1682_s25  ;;  %264 = vrot.lane.b32.xlu0 %v256_v24, %s1682_s25  ;;  %v146_v37 = vld [vmem:[%s2122_s1 + $0x20] sm:$0xff]  ;;  %v64_v38 = vsel %vm54_vm1, %v61_v22, %v63_v32  ;;  %v281_v39 = vsel %vm276_vm3, %v278_v26, %v280_v33  ;;  %v311_v42 = vld [vmem:[%s2124_s3 + $0x18] sm:$0xff]  ;;  %v260_v44 = vrot.slane %v1804_v19, 3  ;;  %v262_v48 = vrot.slane %v1820_v27, 3  ;;  %s1685_s26 = smov 8   ;;  %s1687_s14 = smov 80  }
   0xe   :  { %1495 = vmatprep.subr.mxu1 %v314_v28  ;;  %1471 = vmatprep.subr.mxu0 %v147_v35  ;;  %v145_v43 = vld [vmem:[%s2122_s1 + $0x18] sm:$0xff]  ;;  %v310_v45 = vld [vmem:[%s2124_s3 + $0x10] sm:$0xff]  ;;  %v93_v46 = vsel %vm83_vm0, %v90_v36, %v92_v40  ;;  %v91_v47 = vsel %vm83_vm0, %v89_v41, %v90_v36  ;;  %v259_v49 = vrot.slane %v1799_v18, 3  ;;  %v309_v51 = vld [vmem:[%s2124_s3 + $0x8] sm:$0xff]  ;;  %v283_v52 = vrot.slane %v1804_v19, 4 }
   0xf   :  { %1496 = vmatpush3.msra.mxu1 %v314_v28  ;;  %1472 = vmatpush3.msra.mxu0 %v147_v35  ;;  %v144_v50 = vld [vmem:[%s2122_s1 + $0x10] sm:$0xff]  ;;  %v143_v53 = vld [vmem:[%s2122_s1 + $0x8] sm:$0xff]  ;;  %v263_v54 = vsel %vm253_vm2, %v260_v44, %v262_v48  ;;  %v285_v56 = vrot.slane %v1820_v27, 4  ;;  %v282_v57 = vrot.slane %v1799_v18, 4  ;;  %v308_v58 = vld [vmem:[%s2124_s3] sm:$0xff]  ;;  %vm112_vm4 = vcmask 130048  }
  0x10   :  { %1497 = vmatprep.subr.mxu1 %v313_v29  ;;  %1473 = vmatprep.subr.mxu0 %v146_v37  ;;  %v261_v55 = vsel %vm253_vm2, %v259_v49, %v260_v44  ;;  %v142_v59 = vld [vmem:[%s2122_s1] sm:$0xff]  ;;  %vm119_vm5 = vcmask 261120   ;;  %vm155_vm6 = vcmask 392192   ;;  %vm303_vm7 = vcmask 523264   ;;  %v561_v49 = vld [vmem:[%s2128_s7 + $0x8] sm:$0xff] }
  0x11   :  { %71 = vrot.lane.b32.xlu1 %v62_v30, %s1681_s28  ;;  %287 = vrot.lane.b32.xlu0 %v279_v31, %s1683_s15  ;;  %v286_v60 = vsel %vm276_vm3, %v283_v52, %v285_v56  ;;  %v284_v61 = vsel %vm276_vm3, %v282_v57, %v283_v52  ;;  %vm325_vm8 = vcmask 654336   ;;  %v448_v52 = vld [vmem:[%s2126_s5] sm:$0xff]  ;;  %vm443_vm9 = vcmask 64512  }
  0x12   :  { %1498 = vmatpush3.msra.mxu1 %v313_v29  ;;  %1474 = vmatpush3.msra.mxu0 %v146_v37  ;;  %vm848_vm10 = vcmask 1048448   ;;  %vm830_vm11 = vcmask 523648   ;;  %vm1688_vm12 = vmmov 0   ;;  %vm844_vm13 = vcmask 122880  }
  0x13   :  { %1499 = vmatprep.subr.mxu1 %v312_v34  ;;  %1475 = vmatprep.subr.mxu0 %v145_v43  ;;  %vm1373_vm14 = vcmask 25600  }
  0x14   :  { %1500 = vmatpush3.msra.mxu1 %v312_v34  ;;  %1476 = vmatpush3.msra.mxu0 %v145_v43 }
  0x15   :  { %73 = vrot.lane.b32.xlu1 %v64_v38, %s1681_s28  ;;  %289 = vrot.lane.b32.xlu0 %v281_v39, %s1683_s15 }
  0x16   :  { %1501 = vmatprep.subr.mxu1 %v311_v42  ;;  %1477 = vmatprep.subr.mxu0 %v144_v50 }
  0x17   :  { %1502 = vmatpush3.msra.mxu1 %v311_v42  ;;  %1478 = vmatpush3.msra.mxu0 %v144_v50  ;;  %v1684_v50 = vmov 0.0  }
  0x18   :  { %1503 = vmatprep.subr.mxu1 %v310_v45  ;;  %1479 = vmatprep.subr.mxu0 %v143_v53 }
  0x19   :  { %102 = vrot.lane.b32.xlu1 %v93_v46, %s1680_s27  ;;  %100 = vrot.lane.b32.xlu0 %v91_v47, %s1680_s27 }
  0x1a   :  { %1504 = vmatpush3.msra.mxu1 %v310_v45  ;;  %1480 = vmatpush3.msra.mxu0 %v143_v53  ;;  %v1394_v53 = vld [vmem:[%s2125_s4] ss:$0 sm:$0xff] }
  0x1b   :  { %1505 = vmatprep.subr.mxu1 %v309_v51  ;;  %1481 = vmatprep.subr.mxu0 %v142_v59 }
  0x1c   :  { %1506 = vmatpush3.msra.mxu1 %v309_v51  ;;  %1482 = vmatpush3.msra.mxu0 %v142_v59  ;;  %v449_v51 = vld [vmem:[%s2126_s5 + $0x8] sm:$0xff] }
  0x1d   :  { %270 = vrot.lane.b32.xlu1 %v263_v54, %s1682_s25  ;;  %268 = vrot.lane.b32.xlu0 %v261_v55, %s1682_s25  ;;  %s1690_s25 = smov [#allocation5]  }
  0x1e   :  { %1507 = vmatprep.subr.mxu1 %v308_v58  ;;  %1515 = vmatprep.subr.mxu0 %v449_v51  ;;  %s1381_s19 = sshll.u32 %s1690_s25, 4  ;;  %s1382_s19 = int_to_ptr.vmem [resolvable:$true] %s1381_s19 }
  0x1f   :  { %1508 = vmatpush3.msra.mxu1 %v308_v58  ;;  %s1658_s20 = scalar_lea.vmem %s1382_s19, 32  ;;  %p1663_p1 = scmp.lt.s32.totalorder %s1382_s19, %s1382_s19 }
  0x20   :  { %1532 = vmatprep.subr.mxu1 %v561_v49  ;;  %p1659_p0 = scmp.ne.s32.totalorder %s1382_s19, %s1658_s20  ;;  %p1664_p2 = scmp.lt.s32.totalorder %s1658_s20, %s1658_s20 }
  0x21   :  { %293 = vrot.lane.b32.xlu1 %v286_v60, %s1683_s15  ;;  %291 = vrot.lane.b32.xlu0 %v284_v61, %s1683_s15  ;;  %v559_v60 = vld [vmem:[%s2127_s6 + $0x8] sm:$0xff] }
  0x22   :  { %p1665_p3 = por %p1664_p2, %p1663_p1 }
  0x24   :  { %p1666_p4 = pnand %p1665_p3, %p1659_p0 }
  0x25   :  { %69 = vrot.lane.b32.xlu0 %v58_v8, %s1681_s28  ;;  %98 = vrot.lane.b32.xlu1 %v87_v7, %s1680_s27 }
  0x29   :  { %75 = vrot.lane.b32.xlu0 %v63_v32, %s1681_s28  ;;  %104 = vrot.lane.b32.xlu1 %v92_v40, %s1680_s27 }
  0x77   :  { %v95_v62 = vpop.permute.xlu1 %94  ;;  %v66_v63 = vpop.permute.xlu0 %65 }
  0x78   :  { %v113_v2 = vsel %vm112_vm4, %v1759_v0, %v66_v63 }
  0x79   :  { %v120_v5 = vsel %vm119_vm5, %v113_v2, %v95_v62 }
  0x7a   :  { %v132_v9 = vrot.slane %v120_v5, 1 }
  0x7b   :  { %v97_v3 = vpop.permute.xlu1 %96  ;;  %v68_v4 = vpop.permute.xlu0 %67 }
  0x7c   :  { %v114_v7 = vsel %vm112_vm4, %v1764_v1, %v68_v4 }
  0x7d   :  { %v121_v8 = vsel %vm119_vm5, %v114_v7, %v97_v3 }
  0x7e   :  { %v133_v10 = vrot.slane %v121_v8, 1 }
  0x7f   :  { %v267_v11 = vpop.permute.xlu1 %266  ;;  %v265_v12 = vpop.permute.xlu0 %264 }
  0x80   :  { %v134_v13 = vsel %vm54_vm1, %v132_v9, %v133_v10  ;;  %v299_v0 = vsel %vm155_vm6, %v120_v5, %v265_v12  ;;  %v300_v1 = vsel %vm155_vm6, %v121_v8, %v267_v11 }
  0x81   :  { %1483 = vmatprep.mubr.msk.f32.mxu0 %vm155_vm6, %v134_v13 }
  0x83   :  { %v72_v14 = vpop.permute.xlu1 %71  ;;  %v288_v15 = vpop.permute.xlu0 %287 }
  0x84   :  { %v304_v16 = vsel %vm303_vm7, %v299_v0, %v288_v15  ;;  %v116_v26 = vsel %vm112_vm4, %v1799_v18, %v72_v14 }
  0x85   :  { %1509 = vmatprep.mubr.msk.f32.mxu1 %vm325_vm8, %v304_v16 }
  0x87   :  { %v74_v17 = vpop.permute.xlu1 %73  ;;  %v290_v20 = vpop.permute.xlu0 %289 }
  0x88   :  { %v305_v21 = vsel %vm303_vm7, %v300_v1, %v290_v20  ;;  %v117_v28 = vsel %vm112_vm4, %v1804_v19, %v74_v17  ;;  %v558_v20 = vld [vmem:[%s2127_s6] sm:$0xff] }
  0x89   :  { %1510 = vmatmul.mubr.msk.f32.vlgmr.msra.gmra.mxu1 %vm325_vm8, %v305_v21 }
  0x8a   :  { %1533 = vmatpush3.msra.mxu1 %v561_v49 }
  0x8b   :  { %v103_v22 = vpop.permute.xlu1 %102  ;;  %v101_v23 = vpop.permute.xlu0 %100 }
  0x8c   :  { %v124_v29 = vsel %vm119_vm5, %v117_v28, %v103_v22  ;;  %v123_v30 = vsel %vm119_vm5, %v116_v26, %v101_v23 }
  0x8d   :  { %v138_v38 = vrot.slane %v124_v29, 1  ;;  %v137_v39 = vrot.slane %v123_v30, 1 }
  0x8f   :  { %v271_v24 = vpop.permute.xlu1 %270  ;;  %v269_v25 = vpop.permute.xlu0 %268  ;;  %v139_v47 = vsel %vm54_vm1, %v137_v39, %v138_v38 }
  0x90   :  { %v302_v31 = vsel %vm155_vm6, %v124_v29, %v271_v24  ;;  %v301_v32 = vsel %vm155_vm6, %v123_v30, %v269_v25 }
  0x93   :  { %v294_v33 = vpop.permute.xlu1 %293  ;;  %v292_v34 = vpop.permute.xlu0 %291 }
  0x94   :  { %v307_v35 = vsel %vm303_vm7, %v302_v31, %v294_v33  ;;  %v306_v36 = vsel %vm303_vm7, %v301_v32, %v292_v34  ;;  %v1399_v33 = vld [vmem:[%s2129_s8] ss:$0 sm:$0xff]  ;;  %s1686_s8 = smov 96  }
  0x95   :  { %1512 = vmatprep.mubr.msk.f32.mxu1 %vm325_vm8, %v306_v36 }
  0x96   :  { %1513 = vmatmul.mubr.msk.f32.gmra.mxu1 %vm325_vm8, %v307_v35 }
  0x97   :  { %v70_v18 = vpop.permute.xlu0 %69  ;;  %v99_v19 = vpop.permute.xlu1 %98  ;;  %1536 = vmatprep.mubr.f32.mxu1 %v1684_v50 }
  0x98   :  { %v115_v37 = vsel %vm112_vm4, %v1773_v6, %v70_v18 }
  0x99   :  { %v122_v40 = vsel %vm119_vm5, %v115_v37, %v99_v19 }
  0x9a   :  { %v135_v41 = vrot.slane %v122_v40, 1 }
  0x9b   :  { %v76_v42 = vpop.permute.xlu0 %75  ;;  %v105_v43 = vpop.permute.xlu1 %104 }
  0x9c   :  { %v118_v44 = vsel %vm112_vm4, %v1820_v27, %v76_v42  ;;  %v136_v45 = vsel %vm54_vm1, %v133_v10, %v135_v41  ;;  %v560_v27 = vld [vmem:[%s2128_s7] sm:$0xff] }
  0x9d   :  { %v125_v46 = vsel %vm119_vm5, %v118_v44, %v105_v43  ;;  %1484 = vmatmul.mubr.msk.f32.vlgmr.msra.gmra.mxu0 %vm155_vm6, %v136_v45  ;;  %1534 = vmatprep.subr.mxu1 %v560_v27  ;;  %v1389_v10 = vld [vmem:[%s2123_s2] ss:$0 sm:$0xff] }
  0x9e   :  { %v140_v48 = vrot.slane %v125_v46, 1  ;;  %1486 = vmatprep.mubr.msk.f32.mxu0 %vm155_vm6, %v139_v47  ;;  %1535 = vmatpush3.msra.mxu1 %v560_v27 }
  0x9f   :  { %1537 = vmatmul.mubr.f32.vlgmr.msra.gmra.mxu1 %v1684_v50  ;;  %1546 = vmatprep.subr.mxu1 %v561_v49 }
  0xa0   :  { %v141_v6 = vsel %vm54_vm1, %v138_v38, %v140_v48  ;;  %1547 = vmatpush3.msra.mxu1 %v561_v49  ;;  %1516 = vmatpush3.msra.mxu0 %v449_v51 }
  0xa1   :  { %1487 = vmatmul.mubr.msk.f32.gmra.mxu0 %vm155_vm6, %v141_v6  ;;  %1548 = vmatprep.subr.mxu1 %v560_v27 }
  0xa2   :  { %1549 = vmatpush3.msra.mxu1 %v560_v27  ;;  %1517 = vmatprep.subr.mxu0 %v448_v52 }
  0xa3   :  { %1560 = vmatprep.subr.mxu1 %v1684_v50  ;;  %1518 = vmatpush3.msra.mxu0 %v448_v52 }
  0xa4   :  { %1525 = vmatprep.subr.mxu0 %v559_v60 }
 0x149   :  { %v1511_v54 = vpop.f32.mrf.mxu1 }
 0x14a   :  { %v410_v55 = vadd.f32 %v1511_v54, %v1394_v53 }
 0x14b   :  { %v404_v56 = vpop.f32.mrf.mxu1 }
 0x14c   :  { %v424_v57 = vmax.f32 %v410_v55, 0.0  ;;  %v405_v58 = vadd.f32 %v1394_v53, %v404_v56 }
 0x14e   :  { %v423_v59 = vmax.f32 %v405_v58, 0.0  ;;  %433 = vrot.lane.b32.xlu1 %v424_v57, %s1685_s26 }
 0x150   :  { %431 = vrot.lane.b32.xlu0 %v423_v59, %s1685_s26 }
 0x156   :  { %v1514_v61 = vpop.f32.mrf.mxu1 }
 0x157   :  { %v420_v62 = vadd.f32 %v1514_v61, %v1394_v53 }
 0x158   :  { %v414_v63 = vpop.f32.mrf.mxu1 }
 0x159   :  { %v426_v2 = vmax.f32 %v420_v62, 0.0  ;;  %v415_v3 = vadd.f32 %v1394_v53, %v414_v63 }
 0x15b   :  { %v425_v4 = vmax.f32 %v415_v3, 0.0  ;;  %437 = vrot.lane.b32.xlu1 %v426_v2, %s1685_s26 }
 0x15d   :  { %435 = vrot.lane.b32.xlu0 %v425_v4, %s1685_s26  ;;  %v1485_v8 = vpop.f32.mrf.mxu0 }
 0x15e   :  { %v236_v12 = vadd.f32 %v1485_v8, %v1389_v10 }
 0x15f   :  { %v1538_v5 = vpop.f32.mrf.mxu1  ;;  %v230_v9 = vpop.f32.mrf.mxu0 }
 0x160   :  { %726 = vrot.lane.b32.xlu1 %v1538_v5, %s1683_s15  ;;  %v231_v11 = vadd.f32 %v1389_v10, %v230_v9  ;;  %v250_v14 = vmax.f32 %v236_v12, 0.0 }
 0x161   :  { %v713_v7 = vpop.f32.mrf.mxu1  ;;  %v1488_v16 = vpop.f32.mrf.mxu0 }
 0x162   :  { %724 = vrot.lane.b32.xlu0 %v713_v7, %s1683_s15  ;;  %v249_v13 = vmax.f32 %v231_v11, 0.0  ;;  %v246_v23 = vadd.f32 %v1488_v16, %v1389_v10 }
 0x163   :  { %v240_v21 = vpop.f32.mrf.mxu0 }
 0x164   :  { %v241_v22 = vadd.f32 %v1389_v10, %v240_v21  ;;  %v252_v26 = vmax.f32 %v246_v23, 0.0 }
 0x166   :  { %v251_v24 = vmax.f32 %v241_v22, 0.0 }
 0x1c0   :  { %v434_v0 = vpop.permute.xlu1 %433 }
 0x1c1   :  { %v445_v17 = vsel %vm443_vm9, %v250_v14, %v434_v0 }
 0x1c2   :  { %v432_v15 = vpop.permute.xlu0 %431 }
 0x1c3   :  { %v444_v1 = vsel %vm443_vm9, %v249_v13, %v432_v15 }
 0x1c4   :  { %1519 = vmatprep.mubr.msk.f32.mxu0 %vm112_vm4, %v444_v1 }
 0x1c5   :  { %1520 = vmatmul.mubr.msk.f32.vlgmr.msra.gmra.mxu0 %vm112_vm4, %v445_v17 }
 0x1c6   :  { %1526 = vmatpush3.msra.mxu0 %v559_v60 }
 0x1c7   :  { %1527 = vmatprep.subr.mxu0 %v558_v20 }
 0x1c8   :  { %1528 = vmatpush3.msra.mxu0 %v558_v20 }
 0x1c9   :  { %1539 = vmatprep.subr.mxu0 %v559_v60 }
 0x1cd   :  { %v438_v25 = vpop.permute.xlu1 %437 }
 0x1ce   :  { %v447_v30 = vsel %vm443_vm9, %v252_v26, %v438_v25 }
 0x1cf   :  { %v436_v28 = vpop.permute.xlu0 %435 }
 0x1d0   :  { %v446_v29 = vsel %vm443_vm9, %v251_v24, %v436_v28 }
 0x1d1   :  { %1522 = vmatprep.mubr.msk.f32.mxu0 %vm112_vm4, %v446_v29 }
 0x1d2   :  { %1523 = vmatmul.mubr.msk.f32.gmra.mxu0 %vm112_vm4, %v447_v30  ;;  %v727_v35 = vpop.permute.xlu1 %726 }
 0x1d3   :  { %1529 = vmatprep.mubr.f32.mxu0 %v1684_v50 }
 0x1d4   :  { %v725_v38 = vpop.permute.xlu0 %724 }
 0x1d6   :  { %1530 = vmatmul.mubr.f32.vlgmr.msra.gmra.mxu0 %v1684_v50 }
 0x1d7   :  { %1540 = vmatpush3.msra.mxu0 %v559_v60 }
 0x1d8   :  { %1541 = vmatprep.subr.mxu0 %v558_v20 }
 0x1d9   :  { %1542 = vmatpush3.msra.mxu0 %v558_v20 }
 0x1da   :  { %1553 = vmatprep.subr.mxu0 %v1684_v50 }
 0x285   :  { %v1521_v31 = vpop.f32.mrf.mxu0 }
 0x286   :  { %v1992_v40 = vadd.f32 %v1521_v31, %v1399_v33 }
 0x287   :  { %v535_v32 = vpop.f32.mrf.mxu0 }
 0x288   :  { %v1995_v43 = vadd.f32 %v1399_v33, %v535_v32 }
 0x292   :  { %v1524_v34 = vpop.f32.mrf.mxu0 }
 0x293   :  { %v1987_v36 = vadd.f32 %v1524_v34, %v1399_v33 }
 0x294   :  { %v545_v18 = vpop.f32.mrf.mxu0 }
 0x295   :  { %v731_v19 = vadd.f32 %v727_v35, %v1987_v36  ;;  %v1990_v37 = vadd.f32 %v1399_v33, %v545_v18 }
 0x296   :  { %v1531_v39 = vpop.f32.mrf.mxu0 }
 0x297   :  { %1578 = vtanh.f32 %v731_v19  ;;  %v730_v41 = vadd.f32 %v725_v38, %v1990_v37  ;;  %v646_v44 = vadd.f32 %v1531_v39, %v1992_v40  ;;  %v1407_v49 = vmul.f32 -1.442695, %v731_v19 }
 0x298   :  { %v636_v42 = vpop.f32.mrf.mxu0 }
 0x299   :  { %1580 = vtanh.f32 %v730_v41  ;;  %v645_v45 = vadd.f32 %v636_v42, %v1995_v43  ;;  %v1406_v27 = vmul.f32 -1.442695, %v730_v41  ;;  %v1405_v51 = vmul.f32 -1.442695, %v646_v44 }
 0x29a   :  { %1582 = vtanh.f32 %v646_v44 }
 0x29b   :  { %1584 = vtanh.f32 %v645_v45  ;;  %v1404_v52 = vmul.f32 -1.442695, %v645_v45 }
 0x29c   :  { %1586 = vpow2.f32 %v1407_v49 }
 0x29d   :  { %1588 = vpow2.f32 %v1406_v27 }
 0x29e   :  { %1590 = vpow2.f32 %v1405_v51 }
 0x29f   :  { %1592 = vpow2.f32 %v1404_v52 }
 0x2a4   :  { %v1579_v46 = vpop.eup %1578 }
 0x2a5   :  { %800 = vrot.lane.b32.xlu1 %v1579_v46, %s1686_s8 }
 0x2a6   :  { %v1581_v47 = vpop.eup %1580 }
 0x2a7   :  { %798 = vrot.lane.b32.xlu0 %v1581_v47, %s1686_s8  ;;  %v1583_v48 = vpop.eup %1582 }
 0x2a8   :  { %v1585_v6 = vpop.eup %1584 }
 0x2a9   :  { %752 = vrot.lane.b32.xlu1 %v1583_v48, %s1686_s8  ;;  %v1587_v53 = vpop.eup %1586 }
 0x2aa   :  { %v1589_v54 = vpop.eup %1588  ;;  %v787_v55 = vadd.f32 1.0, %v1587_v53 }
 0x2ab   :  { %750 = vrot.lane.b32.xlu0 %v1585_v6, %s1686_s8  ;;  %v1591_v56 = vpop.eup %1590  ;;  %v786_v57 = vadd.f32 1.0, %v1589_v54 }
 0x2ac   :  { %1594 = vrcp.f32 %v787_v55  ;;  %v1593_v58 = vpop.eup %1592  ;;  %v739_v59 = vadd.f32 1.0, %v1591_v56 }
 0x2ad   :  { %1596 = vrcp.f32 %v786_v57  ;;  %v738_v60 = vadd.f32 1.0, %v1593_v58 }
 0x2ae   :  { %1598 = vrcp.f32 %v739_v59 }
 0x2af   :  { %1600 = vrcp.f32 %v738_v60 }
 0x2b9   :  { %v1595_v61 = vpop.eup %1594 }
 0x2ba   :  { %v1597_v2 = vpop.eup %1596  ;;  %v795_v12 = vmul.f32 0.0, %v1595_v61 }
 0x2bb   :  { %v1599_v5 = vpop.eup %1598  ;;  %v794_v14 = vmul.f32 0.0, %v1597_v2 }
 0x2bc   :  { %v1601_v9 = vpop.eup %1600  ;;  %v747_v1 = vmul.f32 0.0, %v1599_v5 }
 0x2bd   :  { %v746_v21 = vmul.f32 0.0, %v1601_v9 }
 0x317   :  { %v801_v62 = vpop.permute.xlu1 %800 }
 0x318   :  { %v805_v63 = vmul.f32 %v1595_v61, %v801_v62 }
 0x319   :  { %v799_v3 = vpop.permute.xlu0 %798 }
 0x31a   :  { %810 = vrot.lane.b32.xlu1 %v805_v63, %s1681_s28  ;;  %v804_v4 = vmul.f32 %v1597_v2, %v799_v3 }
 0x31b   :  { %v753_v7 = vpop.permute.xlu1 %752 }
 0x31c   :  { %808 = vrot.lane.b32.xlu0 %v804_v4, %s1681_s28  ;;  %v757_v8 = vmul.f32 %v1599_v5, %v753_v7 }
 0x31d   :  { %v751_v10 = vpop.permute.xlu0 %750 }
 0x31e   :  { %v756_v11 = vmul.f32 %v1601_v9, %v751_v10  ;;  %762 = vrot.lane.b32.xlu1 %v757_v8, %s1681_s28 }
 0x320   :  { %760 = vrot.lane.b32.xlu0 %v756_v11, %s1681_s28 }
 0x38c   :  { %v811_v13 = vpop.permute.xlu1 %810 }
 0x38d   :  { %v2007_v0 = vadd.f32 %v811_v13, %v795_v12 }
 0x38e   :  { %v809_v15 = vpop.permute.xlu0 %808 }
 0x38f   :  { %1602 = vtanh.f32 %v2007_v0  ;;  %v2010_v16 = vadd.f32 %v809_v15, %v794_v14 }
 0x390   :  { %v763_v17 = vpop.permute.xlu1 %762 }
 0x391   :  { %1604 = vtanh.f32 %v2010_v16  ;;  %v2013_v20 = vadd.f32 %v763_v17, %v747_v1 }
 0x392   :  { %v761_v22 = vpop.permute.xlu0 %760 }
 0x393   :  { %1606 = vtanh.f32 %v2013_v20  ;;  %v2016_v23 = vadd.f32 %v761_v22, %v746_v21 }
 0x395   :  { %1608 = vtanh.f32 %v2016_v23 }
 0x39c   :  { %v1603_v24 = vpop.eup %1602 }
 0x39d   :  { %822 = vrot.lane.b32.xlu1 %v1603_v24, %s1680_s27 }
 0x39e   :  { %v1605_v25 = vpop.eup %1604 }
 0x39f   :  { %820 = vrot.lane.b32.xlu0 %v1605_v25, %s1680_s27 }
 0x3a0   :  { %v1607_v26 = vpop.eup %1606 }
 0x3a1   :  { %774 = vrot.lane.b32.xlu1 %v1607_v26, %s1680_s27 }
 0x3a2   :  { %v1609_v28 = vpop.eup %1608 }
 0x3a3   :  { %772 = vrot.lane.b32.xlu0 %v1609_v28, %s1680_s27 }
 0x40f   :  { %v823_v29 = vpop.permute.xlu1 %822 }
 0x410   :  { %v827_v30 = vmul.f32 %v1595_v61, %v823_v29 }
 0x411   :  { %v821_v31 = vpop.permute.xlu0 %820 }
 0x412   :  { %959 = vrot.lane.b32.xlu1 %v827_v30, %s1681_s28  ;;  %1610 = vtanh.f32 %v827_v30  ;;  %v826_v32 = vmul.f32 %v1597_v2, %v821_v31 }
 0x413   :  { %v775_v33 = vpop.permute.xlu1 %774 }
 0x414   :  { %1612 = vtanh.f32 %v826_v32  ;;  %957 = vrot.lane.b32.xlu0 %v826_v32, %s1681_s28  ;;  %v779_v34 = vmul.f32 %v1599_v5, %v775_v33 }
 0x415   :  { %v773_v35 = vpop.permute.xlu0 %772 }
 0x416   :  { %1614 = vtanh.f32 %v779_v34  ;;  %v778_v18 = vmul.f32 %v1601_v9, %v773_v35  ;;  %872 = vrot.lane.b32.xlu1 %v779_v34, %s1687_s14 }
 0x418   :  { %1616 = vtanh.f32 %v778_v18  ;;  %870 = vrot.lane.b32.xlu0 %v778_v18, %s1687_s14 }
 0x41f   :  { %v1611_v19 = vpop.eup %1610 }
 0x420   :  { %v850_v41 = vsel %vm848_vm10, %v1611_v19, -inf }
 0x421   :  { %v1613_v38 = vpop.eup %1612 }
 0x422   :  { %v849_v39 = vsel %vm848_vm10, %v1613_v38, -inf }
 0x423   :  { %v2029_v42 = vmax.f32 %v849_v39, %v850_v41  ;;  %v1615_v44 = vpop.eup %1614 }
 0x424   :  { %v832_v47 = vsel %vm830_vm11, %v1615_v44, -inf }
 0x425   :  { %v1617_v45 = vpop.eup %1616 }
 0x426   :  { %v831_v46 = vsel %vm830_vm11, %v1617_v45, -inf }
 0x427   :  { %v2033_v48 = vmax.f32 %v831_v46, %v832_v47 }
 0x429   :  { %v834_v44 = vrot.slane %v2033_v48, 4 }
 0x484   :  { %v960_v6 = vpop.permute.xlu1 %959 }
 0x486   :  { %v958_v49 = vpop.permute.xlu0 %957 }
 0x487   :  { %1550 = vmatprep.mubr.msk.f32.mxu1 %vm112_vm4, %v958_v49 }
 0x488   :  { %1551 = vmatmul.mubr.msk.f32.vlgmr.msra.gmra.mxu1 %vm112_vm4, %v960_v6  ;;  %v873_v51 = vpop.permute.xlu1 %872  ;;  %v835_v6 = vmax.f32 %v2033_v48, %v834_v44 }
 0x489   :  { %1564 = vmatprep.mubr.msk.f32.mxu1 %vm1688_vm12, %v1684_v50 }
 0x48a   :  { %v871_v27 = vpop.permute.xlu0 %870 }
 0x48b   :  { %1543 = vmatprep.mubr.msk.f32.mxu0 %vm112_vm4, %v871_v27  ;;  %v836_v27 = vrot.slane %v835_v6, 2 }
 0x48c   :  { %1544 = vmatmul.mubr.msk.f32.vlgmr.msra.gmra.mxu0 %vm112_vm4, %v873_v51 }
 0x48d   :  { %v837_v51 = vmax.f32 %v835_v6, %v836_v27  ;;  %1557 = vmatprep.mubr.msk.f32.mxu0 %vm1688_vm12, %v1684_v50 }
 0x548   :  { %v1552_v52 = vpop.f32.mrf.mxu1 }
 0x549   :  { %1044 = vrot.lane.b32.xlu1 %v1552_v52, %s1683_s15 }
 0x54a   :  { %v1031_v53 = vpop.f32.mrf.mxu1 }
 0x54b   :  { %1042 = vrot.lane.b32.xlu0 %v1031_v53, %s1683_s15 }
 0x54c   :  { %v1545_v54 = vpop.f32.mrf.mxu0 }
 0x54d   :  { %v954_v55 = vadd.f32 %v1545_v54, %v1987_v36  ;;  %v838_v54 = vrot.slane %v837_v51, 1 }
 0x54e   :  { %v944_v56 = vpop.f32.mrf.mxu0 }
 0x54f   :  { %1618 = vtanh.f32 %v954_v55  ;;  %v953_v57 = vadd.f32 %v944_v56, %v1990_v37  ;;  %v1413_v60 = vmul.f32 -1.442695, %v954_v55 }
 0x551   :  { %1620 = vtanh.f32 %v953_v57  ;;  %v1412_v61 = vmul.f32 -1.442695, %v953_v57  ;;  %v839_v57 = vmax.f32 %v837_v51, %v838_v54  ;;  %v1418_v51 = vld [vmem:[%s2132_s11] ss:$0 sm:$0xff] }
 0x552   :  { %1622 = vpow2.f32 %v1413_v60 }
 0x553   :  { %1624 = vpow2.f32 %v1412_v61 }
 0x55c   :  { %v1619_v58 = vpop.eup %1618 }
 0x55d   :  { %1070 = vrot.lane.b32.xlu1 %v1619_v58, %s1686_s8 }
 0x55e   :  { %v1621_v59 = vpop.eup %1620 }
 0x55f   :  { %1068 = vrot.lane.b32.xlu0 %v1621_v59, %s1686_s8  ;;  %v1623_v63 = vpop.eup %1622 }
 0x560   :  { %v1625_v37 = vpop.eup %1624  ;;  %v1057_v4 = vadd.f32 1.0, %v1623_v63 }
 0x561   :  { %v1056_v5 = vadd.f32 1.0, %v1625_v37 }
 0x5bb   :  { %v1045_v62 = vpop.permute.xlu1 %1044 }
 0x5bc   :  { %v1049_v2 = vadd.f32 %v1045_v62, %v1992_v40 }
 0x5bd   :  { %v1043_v36 = vpop.permute.xlu0 %1042 }
 0x5be   :  { %1626 = vtanh.f32 %v1049_v2  ;;  %v1048_v3 = vadd.f32 %v1043_v36, %v1995_v43  ;;  %v1415_v13 = vmul.f32 -1.442695, %v1049_v2  ;;  %v1184_v2 = vld [vmem:[%s2130_s9 + $0x8] sm:$0xff]  ;;  %v1183_v36 = vld [vmem:[%s2130_s9] sm:$0xff] }
 0x5bf   :  { %1561 = vmatpush3.msra.mxu1 %v1184_v2 }
 0x5c0   :  { %1628 = vtanh.f32 %v1048_v3  ;;  %v1414_v14 = vmul.f32 -1.442695, %v1048_v3  ;;  %1562 = vmatprep.subr.mxu1 %v1684_v50 }
 0x5c1   :  { %1630 = vrcp.f32 %v1057_v4  ;;  %1563 = vmatpush3.msra.mxu1 %v1183_v36 }
 0x5c2   :  { %1632 = vrcp.f32 %v1056_v5 }
 0x5c3   :  { %1634 = vpow2.f32 %v1415_v13 }
 0x5c4   :  { %1636 = vpow2.f32 %v1414_v14 }
 0x5cb   :  { %v1627_v7 = vpop.eup %1626 }
 0x5cc   :  { %1118 = vrot.lane.b32.xlu1 %v1627_v7, %s1686_s8 }
 0x5cd   :  { %v1629_v8 = vpop.eup %1628 }
 0x5ce   :  { %1116 = vrot.lane.b32.xlu0 %v1629_v8, %s1686_s8  ;;  %v2049_v9 = vpop.eup %1630 }
 0x5cf   :  { %v1071_v10 = vpop.permute.xlu1 %1070  ;;  %v2052_v11 = vpop.eup %1632  ;;  %v1065_v30 = vmul.f32 %v2049_v9, %v2013_v20  ;;  %v852_v20 = vrot.slane %v2029_v42, 4 }
 0x5d0   :  { %v1075_v40 = vmul.f32 %v2049_v9, %v1071_v10  ;;  %v1635_v15 = vpop.eup %1634  ;;  %v1064_v33 = vmul.f32 %v2052_v11, %v2016_v23 }
 0x5d1   :  { %v1069_v43 = vpop.permute.xlu0 %1068  ;;  %v1637_v1 = vpop.eup %1636  ;;  %v1105_v17 = vadd.f32 1.0, %v1635_v15  ;;  %v853_v46 = vmax.f32 %v2029_v42, %v852_v20 }
 0x5d2   :  { %1080 = vrot.lane.b32.xlu1 %v1075_v40, %s1681_s28  ;;  %v1074_v12 = vmul.f32 %v2052_v11, %v1069_v43  ;;  %v1104_v21 = vadd.f32 1.0, %v1637_v1 }
 0x5d3   :  { %1638 = vrcp.f32 %v1105_v17  ;;  %v854_v49 = vrot.slane %v853_v46, 2 }
 0x5d4   :  { %1078 = vrot.lane.b32.xlu0 %v1074_v12, %s1681_s28  ;;  %1640 = vrcp.f32 %v1104_v21  ;;  %v1186_v21 = vld [vmem:[%s2131_s10 + $0x8] sm:$0xff] }
 0x5d5   :  { %1554 = vmatpush3.msra.mxu0 %v1186_v21 }
 0x5d6   :  { %1555 = vmatprep.subr.mxu0 %v1684_v50 }
 0x5e0   :  { %v2057_v22 = vpop.eup %1638 }
 0x5e1   :  { %v2060_v26 = vpop.eup %1640  ;;  %v1113_v38 = vmul.f32 %v2057_v22, %v2007_v0  ;;  %v855_v0 = vmax.f32 %v853_v46, %v854_v49 }
 0x5e2   :  { %v1112_v23 = vmul.f32 %v2060_v26, %v2010_v16 }
 0x5e3   :  { %v856_v52 = vrot.slane %v855_v0, 1 }
 0x5e5   :  { %v857_v55 = vmax.f32 %v855_v0, %v856_v52 }
 0x63e   :  { %v1119_v24 = vpop.permute.xlu1 %1118 }
 0x63f   :  { %v1123_v25 = vmul.f32 %v2057_v22, %v1119_v24 }
 0x640   :  { %v1117_v28 = vpop.permute.xlu0 %1116 }
 0x641   :  { %1128 = vrot.lane.b32.xlu1 %v1123_v25, %s1681_s28  ;;  %v1122_v29 = vmul.f32 %v2060_v26, %v1117_v28 }
 0x643   :  { %1126 = vrot.lane.b32.xlu0 %v1122_v29, %s1681_s28 }
 0x644   :  { %v1081_v31 = vpop.permute.xlu1 %1080 }
 0x645   :  { %v1085_v32 = vadd.f32 %v1081_v31, %v1065_v30  ;;  %v1689_v31 = vmov 1966171168  }
 0x646   :  { %v1079_v34 = vpop.permute.xlu0 %1078 }
 0x647   :  { %1642 = vtanh.f32 %v1085_v32  ;;  %v1084_v35 = vadd.f32 %v1079_v34, %v1064_v33  ;;  %v1191_v32 = vunpack.c.l.s4 %v1689_v31  ;;  %v1193_v33 = vlaneseq }
 0x649   :  { %1644 = vtanh.f32 %v1084_v35  ;;  %v1192_v35 = vunpack.c.0.s8 %v1191_v32 }
 0x654   :  { %v1643_v18 = vpop.eup %1642 }
 0x655   :  { %1092 = vrot.lane.b32.xlu1 %v1643_v18, %s1680_s27  ;;  %v1194_v18 = vshrl.u32 %v1193_v33, 7 }
 0x656   :  { %v1645_v19 = vpop.eup %1644 }
 0x657   :  { %1090 = vrot.lane.b32.xlu0 %v1645_v19, %s1680_s27  ;;  %v1195_v19 = vsub.s32 %v1192_v35, %v1194_v18 }
 0x6b3   :  { %v1129_v39 = vpop.permute.xlu1 %1128 }
 0x6b4   :  { %v1133_v41 = vadd.f32 %v1129_v39, %v1113_v38 }
 0x6b5   :  { %v1127_v45 = vpop.permute.xlu0 %1126 }
 0x6b6   :  { %1646 = vtanh.f32 %v1133_v41  ;;  %v1132_v47 = vadd.f32 %v1127_v45, %v1112_v23 }
 0x6b8   :  { %1648 = vtanh.f32 %v1132_v47 }
 0x6c3   :  { %v1647_v53 = vpop.eup %1646 }
 0x6c4   :  { %1140 = vrot.lane.b32.xlu1 %v1647_v53, %s1680_s27 }
 0x6c5   :  { %v1649_v16 = vpop.eup %1648 }
 0x6c6   :  { %1138 = vrot.lane.b32.xlu0 %v1649_v16, %s1680_s27 }
 0x6c7   :  { %v1093_v56 = vpop.permute.xlu1 %1092 }
 0x6c8   :  { %859 = vrot.lane.b32.xlu1 %v857_v55, %s1681_s28  ;;  %v1097_v42 = vmul.f32 %v2049_v9, %v1093_v56 }
 0x6c9   :  { %v1091_v48 = vpop.permute.xlu0 %1090 }
 0x6ca   :  { %841 = vrot.lane.b32.xlu0 %v839_v57, %s1687_s14  ;;  %1650 = vtanh.f32 %v1097_v42  ;;  %v1096_v58 = vmul.f32 %v2052_v11, %v1091_v48 }
 0x6cc   :  { %1652 = vtanh.f32 %v1096_v58 }
 0x6d7   :  { %v1651_v59 = vpop.eup %1650 }
 0x6d8   :  { %v1149_v62 = vsel %vm830_vm11, %v1651_v59, -inf }
 0x6d9   :  { %v1653_v60 = vpop.eup %1652 }
 0x6da   :  { %v1148_v61 = vsel %vm830_vm11, %v1653_v60, -inf }
 0x6db   :  { %v1150_v63 = vmax.f32 %v1148_v61, %v1149_v62 }
 0x6dd   :  { %v1151_v3 = vrot.slane %v1150_v63, 4 }
 0x6df   :  { %v1152_v37 = vmax.f32 %v1150_v63, %v1151_v3 }
 0x6e1   :  { %v1153_v4 = vrot.slane %v1152_v37, 2 }
 0x6e3   :  { %v1154_v5 = vmax.f32 %v1152_v37, %v1153_v4 }
 0x6e5   :  { %v1155_v7 = vrot.slane %v1154_v5, 1 }
 0x6e7   :  { %v1156_v8 = vmax.f32 %v1154_v5, %v1155_v7 }
 0x6e9   :  { %1158 = vrot.lane.b32.xlu0 %v1156_v8, %s1687_s14 }
 0x736   :  { %v1141_v9 = vpop.permute.xlu1 %1140 }
 0x737   :  { %v1145_v10 = vmul.f32 %v2057_v22, %v1141_v9  ;;  %v1185_v22 = vld [vmem:[%s2131_s10] sm:$0xff] }
 0x738   :  { %v1139_v40 = vpop.permute.xlu0 %1138  ;;  %1556 = vmatpush3.msra.mxu0 %v1185_v22 }
 0x739   :  { %1654 = vtanh.f32 %v1145_v10  ;;  %v1144_v11 = vmul.f32 %v2060_v26, %v1139_v40 }
 0x73a   :  { %v860_v43 = vpop.permute.xlu1 %859 }
 0x73b   :  { %863 = vst.msk [vmem:[#allocation4 + $0x1] sm:$0x1] %vm844_vm13, %v860_v43  ;;  %1656 = vtanh.f32 %v1144_v11 }
 0x73c   :  { %v842_v12 = vpop.permute.xlu0 %841 }
 0x73d   :  { %845 = vst.msk [vmem:[#allocation3] sm:$0x1] %vm844_vm13, %v842_v12 }
 0x742   :  { %v1182_v45 = vld [vmem:[#allocation4 + $0x1] sm:$0x1] }
 0x744   :  { %v1179_v38 = vld [vmem:[#allocation3] sm:$0x1] }
 0x746   :  { %v1655_v13 = vpop.eup %1654 }
 0x747   :  { %v1166_v1 = vsel %vm848_vm10, %v1655_v13, -inf }
 0x748   :  { %v1657_v14 = vpop.eup %1656 }
 0x749   :  { %v1165_v15 = vsel %vm848_vm10, %v1657_v14, -inf }
 0x74a   :  { %v1167_v17 = vmax.f32 %v1165_v15, %v1166_v1 }
 0x74c   :  { %v1168_v24 = vrot.slane %v1167_v17, 4 }
 0x74e   :  { %v1169_v25 = vmax.f32 %v1167_v17, %v1168_v24 }
 0x750   :  { %v1170_v26 = vrot.slane %v1169_v25, 2 }
 0x752   :  { %v1171_v28 = vmax.f32 %v1169_v25, %v1170_v26 }
 0x754   :  { %v1172_v29 = vrot.slane %v1171_v28, 1 }
 0x756   :  { %v1173_v30 = vmax.f32 %v1171_v28, %v1172_v29 }
 0x758   :  { %1175 = vrot.lane.b32.xlu1 %v1173_v30, %s1681_s28 }
 0x75b   :  { %v1159_v34 = vpop.permute.xlu0 %1158 }
 0x75c   :  { %1162 = vst.msk [vmem:[#allocation3 + $0x1] sm:$0x1] %vm844_vm13, %v1159_v34 }
 0x763   :  { %v1180_v20 = vld [vmem:[#allocation3 + $0x1] sm:$0x1] }
 0x764   :  { %v1278_v50 = vcombine.low %v1179_v38, %v1180_v20 }
 0x766   :  { %v1285_v39 = vrot.slane %v1278_v50, %v1195_v19 }
 0x768   :  { %v1292_v41 = vrot.slane %v1285_v39, %v1195_v19 }
 0x76a   :  { %1565 = vmatmul.mubr.msk.f32.vlgmr.msra.gmra.mxu1 %vm112_vm4, %v1292_v41 }
 0x7ca   :  { %v1176_v23 = vpop.permute.xlu1 %1175 }
 0x7cb   :  { %1178 = vst.msk [vmem:[#allocation4] sm:$0x1] %vm844_vm13, %v1176_v23 }
 0x7d2   :  { %v1181_v44 = vld [vmem:[#allocation4] sm:$0x1] }
 0x7d3   :  { %v1189_v46 = vcombine.low %v1181_v44, %v1182_v45 }
 0x7d5   :  { %v1196_v47 = vrot.slane %v1189_v46, %v1195_v19 }
 0x7d7   :  { %v1203_v6 = vrot.slane %v1196_v47, %v1195_v19 }
 0x7d9   :  { %1558 = vmatmul.mubr.msk.f32.vlgmr.msra.gmra.mxu0 %vm112_vm4, %v1203_v6 }
 0x82a   :  { %v1361_v49 = vpop.f32.mrf.mxu1 }
 0x82c   :  { %v1566_v27 = vpop.f32.mrf.mxu1 }
 0x899   :  { %v1272_v0 = vpop.f32.mrf.mxu0 }
 0x89a   :  { %v1362_v52 = vadd.f32 %v1361_v49, %v1272_v0 }
 0x89b   :  { %v1559_v53 = vpop.f32.mrf.mxu0 }
 0x89c   :  { %v1372_v54 = vadd.f32 %v1418_v51, %v1362_v52 }
 0x89e   :  { %1374 = vst.msk [vmem:[#allocation5] sm:$0x3] %vm1373_vm14, %v1372_v54 }
 0x89f   :  { %1669 = shalt.err (!%p1666_p4)
}
 0x8a0   :  { %1384 = dma.vmem_to_hbm [thread:$0]  %s1382_s19, 32, %s2133_s12, [#allocation6]  }
 0x8a1   :  { %1678 = dma.done.wait [#allocation6], 32  }
 0x8a2   :  { %1679 = vsyncadd [#allocation6], 4294967264 }
 0x8a3   :  { %1388 = vsyncpa [#allocation6], 1 }

</bundles_post_ra>
